<compile_context>
chip_gen: v5e
topology: v5e:2x2
jax: 0.10.0
libtpu: 0.0.40
codegen_flags: <defaults>
</compile_context>

<pallas_src>
import numpy as np
import jax
import jax.numpy as jnp
from jax.experimental import pallas as pl
from jax.experimental.pallas import tpu as pltpu

_NDIM = 5            # x, y, z, theta, phi
_MATCH_EPS = 1e-4    # tolerance for "rounded value == histogram step"
_STEP_SENTINEL = 1e9 # padding step value that can never match
_MAX_TILE_B = 65536  # ~1.25 MiB/input block; 2 inputs x 2 buffers ~ 5 MiB (v7x-safe)


def _round_up(x, m):
    return ((x + m - 1) // m) * m


def _wmse_kernel(x_ref, t_ref, steps_ref, cscaled_ref, out_ref):
    x = x_ref[...]                        # (5, TILE_B) f32, batch on lanes
    t = t_ref[...]                        # (5, TILE_B)
    rounded = jnp.round(x * 10.0) * 0.1   # round to 1 decimal (round-half-even)

    steps = steps_ref[...]                # (5, S) padded with +1e9 sentinels
    cscaled = cscaled_ref[...]            # (5, S) counts / total, padded with 0

    acc = jnp.zeros_like(x)               # sum of matched scaled counts
    n_bins = steps_ref.shape[1]           # static
    for s in range(n_bins):               # static unroll over histogram bins
        step_col = steps[:, s:s + 1]      # (5, 1) -> lane-broadcast
        cnt_col = cscaled[:, s:s + 1]     # (5, 1)
        match = jnp.abs(rounded - step_col) < _MATCH_EPS
        acc = acc + jnp.where(match, cnt_col, 0.0)

    w = 1.0 - acc                         # unmatched -> acc == 0 -> w == 1
    d = x - t
    err = w * d * d                       # (5, TILE_B)
    # Per-block, lane-dense partial sum (sublane reduce over the 5 components).
    out_ref[...] = jnp.sum(err, axis=0)[None, None, :]   # (1, 1, TILE_B)


def dynamic_weighted_mse_loss(inp, tgt, steps_mat, counts_scaled_mat,
                              *, max_tile_b=_MAX_TILE_B):
    """inp/tgt: (B, 5) f32; steps_mat/counts_scaled_mat: (5, S) f32."""
    B, ndim = inp.shape
    assert ndim == _NDIM and tgt.shape == inp.shape
    S = steps_mat.shape[1]

    # Lane-dense layout: (5, B), pad batch so the lane axis is tile-aligned.
    x = inp.astype(jnp.float32).T
    t = tgt.astype(jnp.float32).T
    tile_b = min(max_tile_b, _round_up(B, 128))
    b_pad = _round_up(B, tile_b)
    if b_pad != B:
        pad = b_pad - B
        # padded entries: x == t == 0 -> (x-t)^2 == 0 -> zero loss contribution
        x = jnp.pad(x, ((0, 0), (0, pad)))
        t = jnp.pad(t, ((0, 0), (0, pad)))
    num_blocks = b_pad // tile_b

    partials = pl.pallas_call(
        _wmse_kernel,
        out_shape=jax.ShapeDtypeStruct((num_blocks, 1, tile_b), jnp.float32),
        grid=(num_blocks,),
        in_specs=[
            pl.BlockSpec((_NDIM, tile_b), lambda i: (0, i)),   # input tile
            pl.BlockSpec((_NDIM, tile_b), lambda i: (0, i)),   # target tile
            pl.BlockSpec((_NDIM, S), lambda i: (0, 0)),        # steps (resident)
            pl.BlockSpec((_NDIM, S), lambda i: (0, 0)),        # scaled counts (resident)
        ],
        out_specs=pl.BlockSpec((1, 1, tile_b), lambda i: (i, 0, 0)),
        compiler_params=pltpu.CompilerParams(
            dimension_semantics=("parallel",)),
    )(x, t, steps_mat, counts_scaled_mat)

    # Tiny XLA-side reduce of the per-block partials + the mean divide.
    return jnp.sum(partials) / jnp.float32(B * _NDIM)


def _build_histograms():
    """Deterministic synthetic 'dataset' histograms (steps rounded to 1 decimal).

    Returns (steps_mat, counts_scaled_mat), both (5, S) f32; counts are
    pre-divided by their per-component totals (host-side pre-scaling).
    """
    rng = np.random.RandomState(0)
    all_steps, all_scaled = [], []
    n_bins = [21, 17, 13, 19, 11]
    for d in range(_NDIM):
        steps = np.round(np.arange(n_bins[d]) * 0.1 - (n_bins[d] // 2) * 0.1, 1)
        counts = rng.randint(1, 50, size=n_bins[d]).astype(np.float32)
        all_steps.append(steps.astype(np.float32))
        all_scaled.append(counts / counts.sum())
    S = max(len(s) for s in all_steps)
    steps_mat = np.full((_NDIM, S), _STEP_SENTINEL, dtype=np.float32)  # never matches
    counts_scaled = np.zeros((_NDIM, S), dtype=np.float32)
    for d in range(_NDIM):
        steps_mat[d, : len(all_steps[d])] = all_steps[d]
        counts_scaled[d, : len(all_scaled[d])] = all_scaled[d]
    return steps_mat, counts_scaled


def _reference(inp, tgt, steps_mat, counts_scaled_mat):
    """Pure-numpy mirror of the PyTorch forward (per-element weight lookup)."""
    inp = np.asarray(inp, np.float32)
    tgt = np.asarray(tgt, np.float32)
    B = inp.shape[0]
    weights = np.ones((B, _NDIM), np.float32)
    for i in range(B):
        for d in range(_NDIM):
            r = np.round(inp[i, d] * 10.0) / 10.0
            hit = np.abs(r - steps_mat[d]) < _MATCH_EPS
            if hit.any():
                idx = int(np.argmax(hit))
                weights[i, d] = 1.0 - counts_scaled_mat[d, idx]
    return float(np.mean(weights * (inp - tgt) ** 2))


if __name__ == "__main__":
    key = jax.random.PRNGKey(0)
    k1, k2 = jax.random.split(key)
    B = 8
    # small values so many rounded entries land inside the histogram support
    inp = jax.random.normal(k1, (B, _NDIM), dtype=jnp.float32) * 0.5
    tgt = jax.random.normal(k2, (B, _NDIM), dtype=jnp.float32) * 0.5

    steps_np, counts_scaled_np = _build_histograms()
    steps_mat = jnp.asarray(steps_np)
    counts_scaled_mat = jnp.asarray(counts_scaled_np)

    loss = dynamic_weighted_mse_loss(inp, tgt, steps_mat, counts_scaled_mat)
    loss = jax.block_until_ready(loss)

    ref = _reference(np.asarray(inp), np.asarray(tgt), steps_np, counts_scaled_np)
    assert np.isclose(float(loss), ref, rtol=1e-5, atol=1e-6), (float(loss), ref)

    print("KERNEL_OK")
</pallas_src>

<mosaic_0001>
module attributes {stable_mosaic.version = 11 : i64} {
  func.func @_wmse_kernel(%arg0: i32, %arg1: memref<5x128xf32, #tpu.memory_space<vmem>>, %arg2: memref<5x128xf32, #tpu.memory_space<vmem>>, %arg3: memref<5x21xf32, #tpu.memory_space<vmem>>, %arg4: memref<5x21xf32, #tpu.memory_space<vmem>>, %arg5: memref<1x1x128xf32, #tpu.memory_space<vmem>>) attributes {dimension_semantics = [#tpu.dimension_semantics<parallel>], iteration_bounds = array<i64: 1>, scalar_prefetch = 0 : i64, scratch_operands = 0 : i64, tpu.core_type = #tpu.core_type<tc>, window_params = [{transform_indices = @transform_0, window_bounds = array<i64: 5, 128>}, {transform_indices = @transform_1, window_bounds = array<i64: 5, 128>}, {pipeline_mode = #tpu.pipeline_mode<synchronous>, transform_indices = @transform_2, window_bounds = array<i64: 5, 21>}, {pipeline_mode = #tpu.pipeline_mode<synchronous>, transform_indices = @transform_3, window_bounds = array<i64: 5, 21>}, {transform_indices = @transform_4, window_bounds = array<i64: 1, 1, 128>}]} {
    %c0 = arith.constant 0 : index
    %c0_0 = arith.constant 0 : index
    %0 = vector.load %arg1[%c0, %c0_0] : memref<5x128xf32, #tpu.memory_space<vmem>>, vector<5x128xf32>
    %c0_1 = arith.constant 0 : index
    %c0_2 = arith.constant 0 : index
    %1 = vector.load %arg2[%c0_1, %c0_2] : memref<5x128xf32, #tpu.memory_space<vmem>>, vector<5x128xf32>
    %cst = arith.constant 1.000000e+01 : f32
    %2 = vector.broadcast %cst : f32 to vector<5x128xf32>
    %3 = arith.mulf %0, %2 : vector<5x128xf32>
    %4 = math.roundeven %3 : vector<5x128xf32>
    %cst_3 = arith.constant 1.000000e-01 : f32
    %5 = vector.broadcast %cst_3 : f32 to vector<5x128xf32>
    %6 = arith.mulf %4, %5 : vector<5x128xf32>
    %c0_4 = arith.constant 0 : index
    %c0_5 = arith.constant 0 : index
    %7 = vector.load %arg3[%c0_4, %c0_5] : memref<5x21xf32, #tpu.memory_space<vmem>>, vector<5x21xf32>
    %c0_6 = arith.constant 0 : index
    %c0_7 = arith.constant 0 : index
    %8 = vector.load %arg4[%c0_6, %c0_7] : memref<5x21xf32, #tpu.memory_space<vmem>>, vector<5x21xf32>
    %cst_8 = arith.constant 0.000000e+00 : f32
    %9 = vector.broadcast %cst_8 : f32 to vector<5x128xf32>
    %10 = vector.extract_strided_slice %7 {offsets = [0, 0], sizes = [5, 1], strides = [1, 1]} : vector<5x21xf32> to vector<5x1xf32>
    %11 = vector.extract_strided_slice %8 {offsets = [0, 0], sizes = [5, 1], strides = [1, 1]} : vector<5x21xf32> to vector<5x1xf32>
    %12 = vector.broadcast %10 : vector<5x1xf32> to vector<5x128xf32>
    %13 = arith.subf %6, %12 : vector<5x128xf32>
    %14 = math.absf %13 : vector<5x128xf32>
    %cst_9 = arith.constant 9.99999974E-5 : f32
    %15 = vector.broadcast %cst_9 : f32 to vector<5x128xf32>
    %16 = arith.cmpf olt, %14, %15 : vector<5x128xf32>
    %cst_10 = arith.constant 0.000000e+00 : f32
    %17 = vector.shape_cast %11 : vector<5x1xf32> to vector<5x1xf32>
    %18 = vector.broadcast %17 : vector<5x1xf32> to vector<5x128xf32>
    %19 = vector.broadcast %cst_10 : f32 to vector<5x128xf32>
    %20 = arith.select %16, %18, %19 : vector<5x128xi1>, vector<5x128xf32>
    %21 = arith.addf %9, %20 : vector<5x128xf32>
    %22 = vector.extract_strided_slice %7 {offsets = [0, 1], sizes = [5, 1], strides = [1, 1]} : vector<5x21xf32> to vector<5x1xf32>
    %23 = vector.extract_strided_slice %8 {offsets = [0, 1], sizes = [5, 1], strides = [1, 1]} : vector<5x21xf32> to vector<5x1xf32>
    %24 = vector.broadcast %22 : vector<5x1xf32> to vector<5x128xf32>
    %25 = arith.subf %6, %24 : vector<5x128xf32>
    %26 = math.absf %25 : vector<5x128xf32>
    %cst_11 = arith.constant 9.99999974E-5 : f32
    %27 = vector.broadcast %cst_11 : f32 to vector<5x128xf32>
    %28 = arith.cmpf olt, %26, %27 : vector<5x128xf32>
    %cst_12 = arith.constant 0.000000e+00 : f32
    %29 = vector.shape_cast %23 : vector<5x1xf32> to vector<5x1xf32>
    %30 = vector.broadcast %29 : vector<5x1xf32> to vector<5x128xf32>
    %31 = vector.broadcast %cst_12 : f32 to vector<5x128xf32>
    %32 = arith.select %28, %30, %31 : vector<5x128xi1>, vector<5x128xf32>
    %33 = arith.addf %21, %32 : vector<5x128xf32>
    %34 = vector.extract_strided_slice %7 {offsets = [0, 2], sizes = [5, 1], strides = [1, 1]} : vector<5x21xf32> to vector<5x1xf32>
    %35 = vector.extract_strided_slice %8 {offsets = [0, 2], sizes = [5, 1], strides = [1, 1]} : vector<5x21xf32> to vector<5x1xf32>
    %36 = vector.broadcast %34 : vector<5x1xf32> to vector<5x128xf32>
    %37 = arith.subf %6, %36 : vector<5x128xf32>
    %38 = math.absf %37 : vector<5x128xf32>
    %cst_13 = arith.constant 9.99999974E-5 : f32
    %39 = vector.broadcast %cst_13 : f32 to vector<5x128xf32>
    %40 = arith.cmpf olt, %38, %39 : vector<5x128xf32>
    %cst_14 = arith.constant 0.000000e+00 : f32
    %41 = vector.shape_cast %35 : vector<5x1xf32> to vector<5x1xf32>
    %42 = vector.broadcast %41 : vector<5x1xf32> to vector<5x128xf32>
    %43 = vector.broadcast %cst_14 : f32 to vector<5x128xf32>
    %44 = arith.select %40, %42, %43 : vector<5x128xi1>, vector<5x128xf32>
    %45 = arith.addf %33, %44 : vector<5x128xf32>
    %46 = vector.extract_strided_slice %7 {offsets = [0, 3], sizes = [5, 1], strides = [1, 1]} : vector<5x21xf32> to vector<5x1xf32>
    %47 = vector.extract_strided_slice %8 {offsets = [0, 3], sizes = [5, 1], strides = [1, 1]} : vector<5x21xf32> to vector<5x1xf32>
    %48 = vector.broadcast %46 : vector<5x1xf32> to vector<5x128xf32>
    %49 = arith.subf %6, %48 : vector<5x128xf32>
    %50 = math.absf %49 : vector<5x128xf32>
    %cst_15 = arith.constant 9.99999974E-5 : f32
    %51 = vector.broadcast %cst_15 : f32 to vector<5x128xf32>
    %52 = arith.cmpf olt, %50, %51 : vector<5x128xf32>
    %cst_16 = arith.constant 0.000000e+00 : f32
    %53 = vector.shape_cast %47 : vector<5x1xf32> to vector<5x1xf32>
    %54 = vector.broadcast %53 : vector<5x1xf32> to vector<5x128xf32>
    %55 = vector.broadcast %cst_16 : f32 to vector<5x128xf32>
    %56 = arith.select %52, %54, %55 : vector<5x128xi1>, vector<5x128xf32>
    %57 = arith.addf %45, %56 : vector<5x128xf32>
    %58 = vector.extract_strided_slice %7 {offsets = [0, 4], sizes = [5, 1], strides = [1, 1]} : vector<5x21xf32> to vector<5x1xf32>
    %59 = vector.extract_strided_slice %8 {offsets = [0, 4], sizes = [5, 1], strides = [1, 1]} : vector<5x21xf32> to vector<5x1xf32>
    %60 = vector.broadcast %58 : vector<5x1xf32> to vector<5x128xf32>
    %61 = arith.subf %6, %60 : vector<5x128xf32>
    %62 = math.absf %61 : vector<5x128xf32>
    %cst_17 = arith.constant 9.99999974E-5 : f32
    %63 = vector.broadcast %cst_17 : f32 to vector<5x128xf32>
    %64 = arith.cmpf olt, %62, %63 : vector<5x128xf32>
    %cst_18 = arith.constant 0.000000e+00 : f32
    %65 = vector.shape_cast %59 : vector<5x1xf32> to vector<5x1xf32>
    %66 = vector.broadcast %65 : vector<5x1xf32> to vector<5x128xf32>
    %67 = vector.broadcast %cst_18 : f32 to vector<5x128xf32>
    %68 = arith.select %64, %66, %67 : vector<5x128xi1>, vector<5x128xf32>
    %69 = arith.addf %57, %68 : vector<5x128xf32>
    %70 = vector.extract_strided_slice %7 {offsets = [0, 5], sizes = [5, 1], strides = [1, 1]} : vector<5x21xf32> to vector<5x1xf32>
    %71 = vector.extract_strided_slice %8 {offsets = [0, 5], sizes = [5, 1], strides = [1, 1]} : vector<5x21xf32> to vector<5x1xf32>
    %72 = vector.broadcast %70 : vector<5x1xf32> to vector<5x128xf32>
    %73 = arith.subf %6, %72 : vector<5x128xf32>
    %74 = math.absf %73 : vector<5x128xf32>
    %cst_19 = arith.constant 9.99999974E-5 : f32
    %75 = vector.broadcast %cst_19 : f32 to vector<5x128xf32>
    %76 = arith.cmpf olt, %74, %75 : vector<5x128xf32>
    %cst_20 = arith.constant 0.000000e+00 : f32
    %77 = vector.shape_cast %71 : vector<5x1xf32> to vector<5x1xf32>
    %78 = vector.broadcast %77 : vector<5x1xf32> to vector<5x128xf32>
    %79 = vector.broadcast %cst_20 : f32 to vector<5x128xf32>
    %80 = arith.select %76, %78, %79 : vector<5x128xi1>, vector<5x128xf32>
    %81 = arith.addf %69, %80 : vector<5x128xf32>
    %82 = vector.extract_strided_slice %7 {offsets = [0, 6], sizes = [5, 1], strides = [1, 1]} : vector<5x21xf32> to vector<5x1xf32>
    %83 = vector.extract_strided_slice %8 {offsets = [0, 6], sizes = [5, 1], strides = [1, 1]} : vector<5x21xf32> to vector<5x1xf32>
    %84 = vector.broadcast %82 : vector<5x1xf32> to vector<5x128xf32>
    %85 = arith.subf %6, %84 : vector<5x128xf32>
    %86 = math.absf %85 : vector<5x128xf32>
    %cst_21 = arith.constant 9.99999974E-5 : f32
    %87 = vector.broadcast %cst_21 : f32 to vector<5x128xf32>
    %88 = arith.cmpf olt, %86, %87 : vector<5x128xf32>
    %cst_22 = arith.constant 0.000000e+00 : f32
    %89 = vector.shape_cast %83 : vector<5x1xf32> to vector<5x1xf32>
    %90 = vector.broadcast %89 : vector<5x1xf32> to vector<5x128xf32>
    %91 = vector.broadcast %cst_22 : f32 to vector<5x128xf32>
    %92 = arith.select %88, %90, %91 : vector<5x128xi1>, vector<5x128xf32>
    %93 = arith.addf %81, %92 : vector<5x128xf32>
    %94 = vector.extract_strided_slice %7 {offsets = [0, 7], sizes = [5, 1], strides = [1, 1]} : vector<5x21xf32> to vector<5x1xf32>
    %95 = vector.extract_strided_slice %8 {offsets = [0, 7], sizes = [5, 1], strides = [1, 1]} : vector<5x21xf32> to vector<5x1xf32>
    %96 = vector.broadcast %94 : vector<5x1xf32> to vector<5x128xf32>
    %97 = arith.subf %6, %96 : vector<5x128xf32>
    %98 = math.absf %97 : vector<5x128xf32>
    %cst_23 = arith.constant 9.99999974E-5 : f32
    %99 = vector.broadcast %cst_23 : f32 to vector<5x128xf32>
    %100 = arith.cmpf olt, %98, %99 : vector<5x128xf32>
    %cst_24 = arith.constant 0.000000e+00 : f32
    %101 = vector.shape_cast %95 : vector<5x1xf32> to vector<5x1xf32>
    %102 = vector.broadcast %101 : vector<5x1xf32> to vector<5x128xf32>
    %103 = vector.broadcast %cst_24 : f32 to vector<5x128xf32>
    %104 = arith.select %100, %102, %103 : vector<5x128xi1>, vector<5x128xf32>
    %105 = arith.addf %93, %104 : vector<5x128xf32>
    %106 = vector.extract_strided_slice %7 {offsets = [0, 8], sizes = [5, 1], strides = [1, 1]} : vector<5x21xf32> to vector<5x1xf32>
    %107 = vector.extract_strided_slice %8 {offsets = [0, 8], sizes = [5, 1], strides = [1, 1]} : vector<5x21xf32> to vector<5x1xf32>
    %108 = vector.broadcast %106 : vector<5x1xf32> to vector<5x128xf32>
    %109 = arith.subf %6, %108 : vector<5x128xf32>
    %110 = math.absf %109 : vector<5x128xf32>
    %cst_25 = arith.constant 9.99999974E-5 : f32
    %111 = vector.broadcast %cst_25 : f32 to vector<5x128xf32>
    %112 = arith.cmpf olt, %110, %111 : vector<5x128xf32>
    %cst_26 = arith.constant 0.000000e+00 : f32
    %113 = vector.shape_cast %107 : vector<5x1xf32> to vector<5x1xf32>
    %114 = vector.broadcast %113 : vector<5x1xf32> to vector<5x128xf32>
    %115 = vector.broadcast %cst_26 : f32 to vector<5x128xf32>
    %116 = arith.select %112, %114, %115 : vector<5x128xi1>, vector<5x128xf32>
    %117 = arith.addf %105, %116 : vector<5x128xf32>
    %118 = vector.extract_strided_slice %7 {offsets = [0, 9], sizes = [5, 1], strides = [1, 1]} : vector<5x21xf32> to vector<5x1xf32>
    %119 = vector.extract_strided_slice %8 {offsets = [0, 9], sizes = [5, 1], strides = [1, 1]} : vector<5x21xf32> to vector<5x1xf32>
    %120 = vector.broadcast %118 : vector<5x1xf32> to vector<5x128xf32>
    %121 = arith.subf %6, %120 : vector<5x128xf32>
    %122 = math.absf %121 : vector<5x128xf32>
    %cst_27 = arith.constant 9.99999974E-5 : f32
    %123 = vector.broadcast %cst_27 : f32 to vector<5x128xf32>
    %124 = arith.cmpf olt, %122, %123 : vector<5x128xf32>
    %cst_28 = arith.constant 0.000000e+00 : f32
    %125 = vector.shape_cast %119 : vector<5x1xf32> to vector<5x1xf32>
    %126 = vector.broadcast %125 : vector<5x1xf32> to vector<5x128xf32>
    %127 = vector.broadcast %cst_28 : f32 to vector<5x128xf32>
    %128 = arith.select %124, %126, %127 : vector<5x128xi1>, vector<5x128xf32>
    %129 = arith.addf %117, %128 : vector<5x128xf32>
    %130 = vector.extract_strided_slice %7 {offsets = [0, 10], sizes = [5, 1], strides = [1, 1]} : vector<5x21xf32> to vector<5x1xf32>
    %131 = vector.extract_strided_slice %8 {offsets = [0, 10], sizes = [5, 1], strides = [1, 1]} : vector<5x21xf32> to vector<5x1xf32>
    %132 = vector.broadcast %130 : vector<5x1xf32> to vector<5x128xf32>
    %133 = arith.subf %6, %132 : vector<5x128xf32>
    %134 = math.absf %133 : vector<5x128xf32>
    %cst_29 = arith.constant 9.99999974E-5 : f32
    %135 = vector.broadcast %cst_29 : f32 to vector<5x128xf32>
    %136 = arith.cmpf olt, %134, %135 : vector<5x128xf32>
    %cst_30 = arith.constant 0.000000e+00 : f32
    %137 = vector.shape_cast %131 : vector<5x1xf32> to vector<5x1xf32>
    %138 = vector.broadcast %137 : vector<5x1xf32> to vector<5x128xf32>
    %139 = vector.broadcast %cst_30 : f32 to vector<5x128xf32>
    %140 = arith.select %136, %138, %139 : vector<5x128xi1>, vector<5x128xf32>
    %141 = arith.addf %129, %140 : vector<5x128xf32>
    %142 = vector.extract_strided_slice %7 {offsets = [0, 11], sizes = [5, 1], strides = [1, 1]} : vector<5x21xf32> to vector<5x1xf32>
    %143 = vector.extract_strided_slice %8 {offsets = [0, 11], sizes = [5, 1], strides = [1, 1]} : vector<5x21xf32> to vector<5x1xf32>
    %144 = vector.broadcast %142 : vector<5x1xf32> to vector<5x128xf32>
    %145 = arith.subf %6, %144 : vector<5x128xf32>
    %146 = math.absf %145 : vector<5x128xf32>
    %cst_31 = arith.constant 9.99999974E-5 : f32
    %147 = vector.broadcast %cst_31 : f32 to vector<5x128xf32>
    %148 = arith.cmpf olt, %146, %147 : vector<5x128xf32>
    %cst_32 = arith.constant 0.000000e+00 : f32
    %149 = vector.shape_cast %143 : vector<5x1xf32> to vector<5x1xf32>
    %150 = vector.broadcast %149 : vector<5x1xf32> to vector<5x128xf32>
    %151 = vector.broadcast %cst_32 : f32 to vector<5x128xf32>
    %152 = arith.select %148, %150, %151 : vector<5x128xi1>, vector<5x128xf32>
    %153 = arith.addf %141, %152 : vector<5x128xf32>
    %154 = vector.extract_strided_slice %7 {offsets = [0, 12], sizes = [5, 1], strides = [1, 1]} : vector<5x21xf32> to vector<5x1xf32>
    %155 = vector.extract_strided_slice %8 {offsets = [0, 12], sizes = [5, 1], strides = [1, 1]} : vector<5x21xf32> to vector<5x1xf32>
    %156 = vector.broadcast %154 : vector<5x1xf32> to vector<5x128xf32>
    %157 = arith.subf %6, %156 : vector<5x128xf32>
    %158 = math.absf %157 : vector<5x128xf32>
    %cst_33 = arith.constant 9.99999974E-5 : f32
    %159 = vector.broadcast %cst_33 : f32 to vector<5x128xf32>
    %160 = arith.cmpf olt, %158, %159 : vector<5x128xf32>
    %cst_34 = arith.constant 0.000000e+00 : f32
    %161 = vector.shape_cast %155 : vector<5x1xf32> to vector<5x1xf32>
    %162 = vector.broadcast %161 : vector<5x1xf32> to vector<5x128xf32>
    %163 = vector.broadcast %cst_34 : f32 to vector<5x128xf32>
    %164 = arith.select %160, %162, %163 : vector<5x128xi1>, vector<5x128xf32>
    %165 = arith.addf %153, %164 : vector<5x128xf32>
    %166 = vector.extract_strided_slice %7 {offsets = [0, 13], sizes = [5, 1], strides = [1, 1]} : vector<5x21xf32> to vector<5x1xf32>
    %167 = vector.extract_strided_slice %8 {offsets = [0, 13], sizes = [5, 1], strides = [1, 1]} : vector<5x21xf32> to vector<5x1xf32>
    %168 = vector.broadcast %166 : vector<5x1xf32> to vector<5x128xf32>
    %169 = arith.subf %6, %168 : vector<5x128xf32>
    %170 = math.absf %169 : vector<5x128xf32>
    %cst_35 = arith.constant 9.99999974E-5 : f32
    %171 = vector.broadcast %cst_35 : f32 to vector<5x128xf32>
    %172 = arith.cmpf olt, %170, %171 : vector<5x128xf32>
    %cst_36 = arith.constant 0.000000e+00 : f32
    %173 = vector.shape_cast %167 : vector<5x1xf32> to vector<5x1xf32>
    %174 = vector.broadcast %173 : vector<5x1xf32> to vector<5x128xf32>
    %175 = vector.broadcast %cst_36 : f32 to vector<5x128xf32>
    %176 = arith.select %172, %174, %175 : vector<5x128xi1>, vector<5x128xf32>
    %177 = arith.addf %165, %176 : vector<5x128xf32>
    %178 = vector.extract_strided_slice %7 {offsets = [0, 14], sizes = [5, 1], strides = [1, 1]} : vector<5x21xf32> to vector<5x1xf32>
    %179 = vector.extract_strided_slice %8 {offsets = [0, 14], sizes = [5, 1], strides = [1, 1]} : vector<5x21xf32> to vector<5x1xf32>
    %180 = vector.broadcast %178 : vector<5x1xf32> to vector<5x128xf32>
    %181 = arith.subf %6, %180 : vector<5x128xf32>
    %182 = math.absf %181 : vector<5x128xf32>
    %cst_37 = arith.constant 9.99999974E-5 : f32
    %183 = vector.broadcast %cst_37 : f32 to vector<5x128xf32>
    %184 = arith.cmpf olt, %182, %183 : vector<5x128xf32>
    %cst_38 = arith.constant 0.000000e+00 : f32
    %185 = vector.shape_cast %179 : vector<5x1xf32> to vector<5x1xf32>
    %186 = vector.broadcast %185 : vector<5x1xf32> to vector<5x128xf32>
    %187 = vector.broadcast %cst_38 : f32 to vector<5x128xf32>
    %188 = arith.select %184, %186, %187 : vector<5x128xi1>, vector<5x128xf32>
    %189 = arith.addf %177, %188 : vector<5x128xf32>
    %190 = vector.extract_strided_slice %7 {offsets = [0, 15], sizes = [5, 1], strides = [1, 1]} : vector<5x21xf32> to vector<5x1xf32>
    %191 = vector.extract_strided_slice %8 {offsets = [0, 15], sizes = [5, 1], strides = [1, 1]} : vector<5x21xf32> to vector<5x1xf32>
    %192 = vector.broadcast %190 : vector<5x1xf32> to vector<5x128xf32>
    %193 = arith.subf %6, %192 : vector<5x128xf32>
    %194 = math.absf %193 : vector<5x128xf32>
    %cst_39 = arith.constant 9.99999974E-5 : f32
    %195 = vector.broadcast %cst_39 : f32 to vector<5x128xf32>
    %196 = arith.cmpf olt, %194, %195 : vector<5x128xf32>
    %cst_40 = arith.constant 0.000000e+00 : f32
    %197 = vector.shape_cast %191 : vector<5x1xf32> to vector<5x1xf32>
    %198 = vector.broadcast %197 : vector<5x1xf32> to vector<5x128xf32>
    %199 = vector.broadcast %cst_40 : f32 to vector<5x128xf32>
    %200 = arith.select %196, %198, %199 : vector<5x128xi1>, vector<5x128xf32>
    %201 = arith.addf %189, %200 : vector<5x128xf32>
    %202 = vector.extract_strided_slice %7 {offsets = [0, 16], sizes = [5, 1], strides = [1, 1]} : vector<5x21xf32> to vector<5x1xf32>
    %203 = vector.extract_strided_slice %8 {offsets = [0, 16], sizes = [5, 1], strides = [1, 1]} : vector<5x21xf32> to vector<5x1xf32>
    %204 = vector.broadcast %202 : vector<5x1xf32> to vector<5x128xf32>
    %205 = arith.subf %6, %204 : vector<5x128xf32>
    %206 = math.absf %205 : vector<5x128xf32>
    %cst_41 = arith.constant 9.99999974E-5 : f32
    %207 = vector.broadcast %cst_41 : f32 to vector<5x128xf32>
    %208 = arith.cmpf olt, %206, %207 : vector<5x128xf32>
    %cst_42 = arith.constant 0.000000e+00 : f32
    %209 = vector.shape_cast %203 : vector<5x1xf32> to vector<5x1xf32>
    %210 = vector.broadcast %209 : vector<5x1xf32> to vector<5x128xf32>
    %211 = vector.broadcast %cst_42 : f32 to vector<5x128xf32>
    %212 = arith.select %208, %210, %211 : vector<5x128xi1>, vector<5x128xf32>
    %213 = arith.addf %201, %212 : vector<5x128xf32>
    %214 = vector.extract_strided_slice %7 {offsets = [0, 17], sizes = [5, 1], strides = [1, 1]} : vector<5x21xf32> to vector<5x1xf32>
    %215 = vector.extract_strided_slice %8 {offsets = [0, 17], sizes = [5, 1], strides = [1, 1]} : vector<5x21xf32> to vector<5x1xf32>
    %216 = vector.broadcast %214 : vector<5x1xf32> to vector<5x128xf32>
    %217 = arith.subf %6, %216 : vector<5x128xf32>
    %218 = math.absf %217 : vector<5x128xf32>
    %cst_43 = arith.constant 9.99999974E-5 : f32
    %219 = vector.broadcast %cst_43 : f32 to vector<5x128xf32>
    %220 = arith.cmpf olt, %218, %219 : vector<5x128xf32>
    %cst_44 = arith.constant 0.000000e+00 : f32
    %221 = vector.shape_cast %215 : vector<5x1xf32> to vector<5x1xf32>
    %222 = vector.broadcast %221 : vector<5x1xf32> to vector<5x128xf32>
    %223 = vector.broadcast %cst_44 : f32 to vector<5x128xf32>
    %224 = arith.select %220, %222, %223 : vector<5x128xi1>, vector<5x128xf32>
    %225 = arith.addf %213, %224 : vector<5x128xf32>
    %226 = vector.extract_strided_slice %7 {offsets = [0, 18], sizes = [5, 1], strides = [1, 1]} : vector<5x21xf32> to vector<5x1xf32>
    %227 = vector.extract_strided_slice %8 {offsets = [0, 18], sizes = [5, 1], strides = [1, 1]} : vector<5x21xf32> to vector<5x1xf32>
    %228 = vector.broadcast %226 : vector<5x1xf32> to vector<5x128xf32>
    %229 = arith.subf %6, %228 : vector<5x128xf32>
    %230 = math.absf %229 : vector<5x128xf32>
    %cst_45 = arith.constant 9.99999974E-5 : f32
    %231 = vector.broadcast %cst_45 : f32 to vector<5x128xf32>
    %232 = arith.cmpf olt, %230, %231 : vector<5x128xf32>
    %cst_46 = arith.constant 0.000000e+00 : f32
    %233 = vector.shape_cast %227 : vector<5x1xf32> to vector<5x1xf32>
    %234 = vector.broadcast %233 : vector<5x1xf32> to vector<5x128xf32>
    %235 = vector.broadcast %cst_46 : f32 to vector<5x128xf32>
    %236 = arith.select %232, %234, %235 : vector<5x128xi1>, vector<5x128xf32>
    %237 = arith.addf %225, %236 : vector<5x128xf32>
    %238 = vector.extract_strided_slice %7 {offsets = [0, 19], sizes = [5, 1], strides = [1, 1]} : vector<5x21xf32> to vector<5x1xf32>
    %239 = vector.extract_strided_slice %8 {offsets = [0, 19], sizes = [5, 1], strides = [1, 1]} : vector<5x21xf32> to vector<5x1xf32>
    %240 = vector.broadcast %238 : vector<5x1xf32> to vector<5x128xf32>
    %241 = arith.subf %6, %240 : vector<5x128xf32>
    %242 = math.absf %241 : vector<5x128xf32>
    %cst_47 = arith.constant 9.99999974E-5 : f32
    %243 = vector.broadcast %cst_47 : f32 to vector<5x128xf32>
    %244 = arith.cmpf olt, %242, %243 : vector<5x128xf32>
    %cst_48 = arith.constant 0.000000e+00 : f32
    %245 = vector.shape_cast %239 : vector<5x1xf32> to vector<5x1xf32>
    %246 = vector.broadcast %245 : vector<5x1xf32> to vector<5x128xf32>
    %247 = vector.broadcast %cst_48 : f32 to vector<5x128xf32>
    %248 = arith.select %244, %246, %247 : vector<5x128xi1>, vector<5x128xf32>
    %249 = arith.addf %237, %248 : vector<5x128xf32>
    %250 = vector.extract_strided_slice %7 {offsets = [0, 20], sizes = [5, 1], strides = [1, 1]} : vector<5x21xf32> to vector<5x1xf32>
    %251 = vector.extract_strided_slice %8 {offsets = [0, 20], sizes = [5, 1], strides = [1, 1]} : vector<5x21xf32> to vector<5x1xf32>
    %252 = vector.broadcast %250 : vector<5x1xf32> to vector<5x128xf32>
    %253 = arith.subf %6, %252 : vector<5x128xf32>
    %254 = math.absf %253 : vector<5x128xf32>
    %cst_49 = arith.constant 9.99999974E-5 : f32
    %255 = vector.broadcast %cst_49 : f32 to vector<5x128xf32>
    %256 = arith.cmpf olt, %254, %255 : vector<5x128xf32>
    %cst_50 = arith.constant 0.000000e+00 : f32
    %257 = vector.shape_cast %251 : vector<5x1xf32> to vector<5x1xf32>
    %258 = vector.broadcast %257 : vector<5x1xf32> to vector<5x128xf32>
    %259 = vector.broadcast %cst_50 : f32 to vector<5x128xf32>
    %260 = arith.select %256, %258, %259 : vector<5x128xi1>, vector<5x128xf32>
    %261 = arith.addf %249, %260 : vector<5x128xf32>
    %cst_51 = arith.constant 1.000000e+00 : f32
    %262 = vector.broadcast %cst_51 : f32 to vector<5x128xf32>
    %263 = arith.subf %262, %261 : vector<5x128xf32>
    %264 = arith.subf %0, %1 : vector<5x128xf32>
    %265 = arith.mulf %263, %264 : vector<5x128xf32>
    %266 = arith.mulf %265, %264 : vector<5x128xf32>
    %cst_52 = arith.constant dense<0.000000e+00> : vector<128xf32>
    %267 = vector.multi_reduction <add>, %266, %cst_52 [0] : vector<5x128xf32> to vector<128xf32>
    %268 = vector.shape_cast %267 : vector<128xf32> to vector<1x1x128xf32>
    %c0_53 = arith.constant 0 : index
    %c0_54 = arith.constant 0 : index
    %c0_55 = arith.constant 0 : index
    %269 = vector.load %arg5[%c0_53, %c0_54, %c0_55] : memref<1x1x128xf32, #tpu.memory_space<vmem>>, vector<1x1x128xf32>
    tpu.vector_store %arg5[%c0_53, %c0_54, %c0_55], %268 {strides = array<i32>} : memref<1x1x128xf32, #tpu.memory_space<vmem>>, vector<1x1x128xf32>,
    return
  }
  func.func @transform_0(%arg0: i32) -> (i32, i32) {
    %c0_i32 = arith.constant 0 : i32
    %c0_i32_0 = arith.constant 0 : i32
    return %c0_i32, %arg0 : i32, i32
  }
  func.func @transform_1(%arg0: i32) -> (i32, i32) {
    %c0_i32 = arith.constant 0 : i32
    %c0_i32_0 = arith.constant 0 : i32
    return %c0_i32, %arg0 : i32, i32
  }
  func.func @transform_2(%arg0: i32) -> (i32, i32) {
    %c0_i32 = arith.constant 0 : i32
    %c0_i32_0 = arith.constant 0 : i32
    %c0_i32_1 = arith.constant 0 : i32
    return %c0_i32, %c0_i32_0 : i32, i32
  }
  func.func @transform_3(%arg0: i32) -> (i32, i32) {
    %c0_i32 = arith.constant 0 : i32
    %c0_i32_0 = arith.constant 0 : i32
    %c0_i32_1 = arith.constant 0 : i32
    return %c0_i32, %c0_i32_0 : i32, i32
  }
  func.func @transform_4(%arg0: i32) -> (i32, i32, i32) {
    %c0_i32 = arith.constant 0 : i32
    %c0_i32_0 = arith.constant 0 : i32
    %c0_i32_1 = arith.constant 0 : i32
    return %arg0, %c0_i32, %c0_i32_0 : i32, i32, i32
  }
}

</mosaic_0001>

<bundles_post_ra>
// kernel: tpu_custom_call.1
= control target key start
LH: loop header
LB: loop body
LE: loop exit
PB: predicated region body
PF: predicated region fallthrough
CT: control target
= control target key end

     0   :  { %9 = vsyncpa [#allocation3], 0  ;;  %s726_s0 = inlined_call_operand.hbm [shape: f32[5,128], index: 0, kind: input, shape index: {}]   ;;  %s727_s1 = inlined_call_operand.hbm [shape: f32[5,128], index: 1, kind: input, shape index: {}]   ;;  %s728_s2 = inlined_call_operand.hbm [shape: f32[5,21], index: 2, kind: input, shape index: {}]   ;;  %s729_s3 = inlined_call_operand.hbm [shape: f32[5,21], index: 3, kind: input, shape index: {}]   ;;  %s730_s4 = inlined_call_operand.hbm [shape: f32[1,1,128], index: 4, kind: output, shape index: {}]  }
   0x1   :  { %10 = vsyncpa [#allocation6], 0 }
   0x2   :  { %11 = vsyncpa [#allocation9], 0  ;;  %s29_s17 = sshll.u32 %s727_s1, 4  ;;  %s30_s17 = int_to_ptr.hbm [resolvable:$true] %s29_s17 }
   0x3   :  { %12 = vsyncpa [#allocation4], 0  ;;  %s587_s18 = smov [#allocation5]   ;;  %s18_s22 = sshll.u32 %s726_s0, 4  ;;  %s19_s22 = int_to_ptr.hbm [resolvable:$true] %s18_s22 }
   0x4   :  { %s31_s19 = sshll.u32 %s587_s18, 4  ;;  %s588_s23 = smov [#allocation2]   ;;  %s32_s19 = int_to_ptr.vmem [resolvable:$true] %s31_s19 }
   0x5   :  { %34 = dma.hbm_to_vmem [thread:$0]  %s30_s17, 128, %s32_s19, [#allocation6]  }
   0x6   :  { %s20_s24 = sshll.u32 %s588_s23, 4  ;;  %s40_s27 = sshll.u32 %s728_s2, 4  ;;  %s21_s24 = int_to_ptr.vmem [resolvable:$true] %s20_s24  ;;  %s41_s27 = int_to_ptr.hbm [resolvable:$true] %s40_s27 }
   0x7   :  { %23 = dma.hbm_to_vmem [thread:$0]  %s19_s22, 128, %s21_s24, [#allocation3]  }
   0x8   :  { %s51_s29 = sshll.u32 %s729_s3, 4  ;;  %s589_s30 = smov [#allocation7]   ;;  %s52_s29 = int_to_ptr.hbm [resolvable:$true] %s51_s29 }
   0x9   :  { %s42_s5 = sshll.u32 %s589_s30, 4  ;;  %s590_s0 = smov [#allocation8]   ;;  %s43_s5 = int_to_ptr.vmem [resolvable:$true] %s42_s5 }
   0xa   :  { %45 = dma.hbm_to_vmem [thread:$0]  %s41_s27, 128, %s43_s5, [#allocation6]  }
   0xb   :  { %s53_s6 = sshll.u32 %s590_s0, 4  ;;  %s54_s6 = int_to_ptr.vmem [resolvable:$true] %s53_s6 }
   0xc   :  { %56 = dma.hbm_to_vmem [thread:$0]  %s52_s29, 128, %s54_s6, [#allocation9]  }
   0xd   :  { %579 = dma.done.wait [#allocation3], 128  }
   0xe   :  { %580 = vsyncadd [#allocation3], 4294967168 }
   0xf   :  { %581 = dma.done.wait [#allocation6], 256  }
  0x10   :  { %582 = vsyncadd [#allocation6], 4294967040 }
  0x11   :  { %583 = dma.done.wait [#allocation9], 128  }
  0x12   :  { %584 = vsyncadd [#allocation9], 4294967168  ;;  %v591_v0 = vmov 1   ;;  %v592_v1 = vmov 0   ;;  %v593_v2 = vmov 2   ;;  %v594_v5 = vmov 3  }
  0x13   :  { %422 = vset.pattern.permute.xlu1 %v591_v0  ;;  %421 = vset.pattern.permute.xlu0 %v592_v1  ;;  %v650_v3 = vld [vmem:[#allocation7] sm:$0x1f]  ;;  %v655_v4 = vld [vmem:[#allocation8] sm:$0x1f]  ;;  %v595_v6 = vmov 4   ;;  %v596_v7 = vmov 5  }
  0x14   :  { %423 = vset.pattern.permute.xlu2 %v593_v2  ;;  %96 = vperm.xlu1 %422, %v650_v3   ;;  %v597_v8 = vmov 6   ;;  %v598_v9 = vmov 8   ;;  %v599_v10 = vmov 7   ;;  %v600_v11 = vmov 10   ;;  %v675_v15 = vld [vmem:[#allocation2] sm:$0x1f] }
  0x15   :  { %82 = vperm.xlu0 %421, %v650_v3   ;;  %109 = vperm.xlu2 %423, %v650_v3   ;;  %v601_v12 = vmov 13   ;;  %v602_v13 = vmov 9   ;;  %v603_v14 = vmov 16   ;;  %v75_v16 = vmul.f32 10.0, %v675_v15  ;;  %s612_s2 = smov [#allocation10]   ;;  %s375_s9 = sshll.u32 %s730_s4, 4  ;;  %s376_s9 = int_to_ptr.hbm [resolvable:$true] %s375_s9 }
  0x16   :  { %v604_v18 = vmov 11   ;;  %v605_v23 = vmov 12   ;;  %v606_v27 = vmov 14   ;;  %v607_v28 = vmov 19   ;;  %s373_s3 = sshll.u32 %s612_s2, 4  ;;  %s374_s3 = int_to_ptr.vmem [resolvable:$true] %s373_s3 }
  0x17   :  { %v389_v17 = vcvt.f32.s32 %v75_v16  ;;  %v392_v21 = vand.u32 2147483648, %v75_v16  ;;  %v387_v22 = vand.u32 2147483647, %v75_v16  ;;  %v608_v32 = vmov 15  }
  0x18   :  { %v609_v34 = vmov 20   ;;  %v610_v36 = vmov 17   ;;  %v611_v41 = vmov 18  }
  0x19   :  { %v390_v19 = vcvt.s32.f32 %v389_v17  ;;  %vm388_vm0 = vcmp.lt.f32.partialorder %v387_v22, 8388608.0 }
  0x1b   :  { %v391_v20 = vand.u32 2147483647, %v390_v19 }
  0x1c   :  { %103 = vperm.xlu1 %422, %v655_v4  }
  0x1d   :  { %90 = vperm.xlu0 %421, %v655_v4   ;;  %116 = vperm.xlu2 %423, %v655_v4   ;;  %v393_v24 = vor.u32 %v392_v21, %v391_v20 }
  0x1f   :  { %v394_v25 = vsel %vm388_vm0, %v393_v24, %v75_v16 }
  0x20   :  { %v685_v26 = vmul.f32 0.1, %v394_v25 }
  0x24   :  { %425 = vset.pattern.permute.xlu1 %v594_v5 }
  0x25   :  { %424 = vset.pattern.permute.xlu0 %v594_v5  ;;  %129 = vperm.xlu1 %425, %v655_v4  }
  0x26   :  { %122 = vperm.xlu0 %424, %v650_v3   ;;  %426 = vset.pattern.permute.xlu2 %v595_v6 }
  0x27   :  { %135 = vperm.xlu2 %426, %v650_v3  }
  0x2d   :  { %427 = vset.pattern.permute.xlu1 %v595_v6 }
  0x2e   :  { %429 = vset.pattern.permute.xlu0 %v596_v7  ;;  %142 = vperm.xlu1 %427, %v655_v4  }
  0x2f   :  { %155 = vperm.xlu0 %429, %v655_v4   ;;  %428 = vset.pattern.permute.xlu2 %v596_v7 }
  0x30   :  { %148 = vperm.xlu2 %428, %v650_v3  }
  0x36   :  { %430 = vset.pattern.permute.xlu1 %v597_v8 }
  0x37   :  { %434 = vset.pattern.permute.xlu0 %v598_v9  ;;  %161 = vperm.xlu1 %430, %v650_v3  }
  0x38   :  { %187 = vperm.xlu0 %434, %v650_v3   ;;  %431 = vset.pattern.permute.xlu2 %v597_v8 }
  0x39   :  { %168 = vperm.xlu2 %431, %v655_v4  }
  0x3f   :  { %432 = vset.pattern.permute.xlu1 %v599_v10 }
  0x40   :  { %439 = vset.pattern.permute.xlu0 %v600_v11  ;;  %174 = vperm.xlu1 %432, %v650_v3  }
  0x41   :  { %220 = vperm.xlu0 %439, %v655_v4   ;;  %433 = vset.pattern.permute.xlu2 %v599_v10 }
  0x42   :  { %181 = vperm.xlu2 %433, %v655_v4  }
  0x48   :  { %435 = vset.pattern.permute.xlu1 %v598_v9 }
  0x49   :  { %444 = vset.pattern.permute.xlu0 %v601_v12  ;;  %194 = vperm.xlu1 %435, %v655_v4  }
  0x4a   :  { %252 = vperm.xlu0 %444, %v650_v3   ;;  %436 = vset.pattern.permute.xlu2 %v602_v13 }
  0x4b   :  { %200 = vperm.xlu2 %436, %v650_v3  }
  0x51   :  { %437 = vset.pattern.permute.xlu1 %v602_v13 }
  0x52   :  { %449 = vset.pattern.permute.xlu0 %v603_v14  ;;  %207 = vperm.xlu1 %437, %v655_v4  }
  0x53   :  { %291 = vperm.xlu0 %449, %v650_v3   ;;  %438 = vset.pattern.permute.xlu2 %v600_v11 }
  0x54   :  { %213 = vperm.xlu2 %438, %v650_v3  }
  0x5a   :  { %440 = vset.pattern.permute.xlu1 %v604_v18 }
  0x5b   :  { %226 = vperm.xlu1 %440, %v650_v3   ;;  %453 = vset.pattern.permute.xlu0 %v607_v28 }
  0x5c   :  { %441 = vset.pattern.permute.xlu2 %v604_v18  ;;  %330 = vperm.xlu0 %453, %v650_v3  }
  0x5d   :  { %233 = vperm.xlu2 %441, %v655_v4  }
  0x63   :  { %442 = vset.pattern.permute.xlu1 %v605_v23 }
  0x64   :  { %239 = vperm.xlu1 %442, %v650_v3   ;;  %458 = vset.pattern.permute.xlu0 %v609_v34 }
  0x65   :  { %443 = vset.pattern.permute.xlu2 %v605_v23  ;;  %350 = vperm.xlu0 %458, %v655_v4  }
  0x66   :  { %246 = vperm.xlu2 %443, %v655_v4  }
  0x6c   :  { %445 = vset.pattern.permute.xlu1 %v601_v12 }
  0x6d   :  { %259 = vperm.xlu1 %445, %v655_v4  }
  0x6e   :  { %446 = vset.pattern.permute.xlu2 %v606_v27 }
  0x6f   :  { %265 = vperm.xlu2 %446, %v650_v3   ;;  %v110_v29 = vpop.permute.xlu2 %109 }
  0x70   :  { %v112_v30 = vsub.f32 %v685_v26, %v110_v29 }
  0x72   :  { %v113_v31 = vand.u32 2147483647, %v112_v30 }
  0x74   :  { %vm114_vm1 = vcmp.lt.f32.partialorder %v113_v31, 0.0001 }
  0x75   :  { %447 = vset.pattern.permute.xlu1 %v606_v27 }
  0x76   :  { %272 = vperm.xlu1 %447, %v655_v4  }
  0x77   :  { %448 = vset.pattern.permute.xlu2 %v608_v32  ;;  %v117_v33 = vpop.permute.xlu2 %116 }
  0x78   :  { %278 = vperm.xlu2 %448, %v650_v3   ;;  %v119_v35 = vsel %vm114_vm1, %v117_v33, 0.0 }
  0x7e   :  { %450 = vset.pattern.permute.xlu1 %v610_v36 }
  0x7f   :  { %304 = vperm.xlu1 %450, %v650_v3  }
  0x80   :  { %285 = vperm.xlu2 %448, %v655_v4  }
  0x81   :  { %v136_v44 = vpop.permute.xlu2 %135 }
  0x82   :  { %v138_v51 = vsub.f32 %v685_v26, %v136_v44 }
  0x84   :  { %v139_v56 = vand.u32 2147483647, %v138_v51 }
  0x86   :  { %v97_v37 = vpop.permute.xlu1 %96  ;;  %vm140_vm5 = vcmp.lt.f32.partialorder %v139_v56, 0.0001 }
  0x87   :  { %v83_v38 = vpop.permute.xlu0 %82  ;;  %v99_v39 = vsub.f32 %v685_v26, %v97_v37  ;;  %451 = vset.pattern.permute.xlu1 %v611_v41 }
  0x88   :  { %v85_v40 = vsub.f32 %v685_v26, %v83_v38  ;;  %317 = vperm.xlu1 %451, %v650_v3   ;;  %452 = vset.pattern.permute.xlu2 %v603_v14 }
  0x89   :  { %298 = vperm.xlu2 %452, %v655_v4   ;;  %v100_v43 = vand.u32 2147483647, %v99_v39 }
  0x8a   :  { %v86_v42 = vand.u32 2147483647, %v85_v40  ;;  %v149_v52 = vpop.permute.xlu2 %148 }
  0x8b   :  { %vm101_vm3 = vcmp.lt.f32.partialorder %v100_v43, 0.0001  ;;  %v151_v16 = vsub.f32 %v685_v26, %v149_v52 }
  0x8c   :  { %vm87_vm2 = vcmp.lt.f32.partialorder %v86_v42, 0.0001 }
  0x8d   :  { %v152_v18 = vand.u32 2147483647, %v151_v16 }
  0x8e   :  { %v104_v45 = vpop.permute.xlu1 %103 }
  0x8f   :  { %v91_v46 = vpop.permute.xlu0 %90  ;;  %v106_v47 = vsel %vm101_vm3, %v104_v45, 0.0  ;;  %vm153_vm6 = vcmp.lt.f32.partialorder %v152_v18, 0.0001 }
  0x90   :  { %v93_v48 = vsel %vm87_vm2, %v91_v46, 0.0  ;;  %454 = vset.pattern.permute.xlu1 %v610_v36 }
  0x91   :  { %v107_v49 = vadd.f32 %v106_v47, %v93_v48  ;;  %311 = vperm.xlu1 %454, %v655_v4   ;;  %455 = vset.pattern.permute.xlu2 %v609_v34 }
  0x92   :  { %343 = vperm.xlu2 %455, %v650_v3  }
  0x93   :  { %v120_v50 = vadd.f32 %v119_v35, %v107_v49  ;;  %v169_v61 = vpop.permute.xlu2 %168 }
  0x97   :  { %v130_v53 = vpop.permute.xlu1 %129 }
  0x98   :  { %v123_v54 = vpop.permute.xlu0 %122 }
  0x99   :  { %v125_v55 = vsub.f32 %v685_v26, %v123_v54  ;;  %456 = vset.pattern.permute.xlu1 %v611_v41 }
  0x9a   :  { %324 = vperm.xlu1 %456, %v655_v4   ;;  %457 = vset.pattern.permute.xlu2 %v607_v28 }
  0x9b   :  { %v126_v57 = vand.u32 2147483647, %v125_v55  ;;  %337 = vperm.xlu2 %457, %v655_v4  }
  0x9c   :  { %v182_v1 = vpop.permute.xlu2 %181 }
  0x9d   :  { %vm127_vm4 = vcmp.lt.f32.partialorder %v126_v57, 0.0001 }
  0x9e   :  { %v132_v58 = vsel %vm127_vm4, %v130_v53, 0.0 }
  0x9f   :  { %v133_v59 = vadd.f32 %v132_v58, %v120_v50 }
  0xa0   :  { %v143_v60 = vpop.permute.xlu1 %142 }
  0xa1   :  { %v145_v62 = vsel %vm140_vm5, %v143_v60, 0.0  ;;  %v156_v4 = vpop.permute.xlu0 %155 }
  0xa2   :  { %v146_v63 = vadd.f32 %v145_v62, %v133_v59  ;;  %v158_v29 = vsel %vm153_vm6, %v156_v4, 0.0  ;;  %vm359_vm6 = vcmask 1044480  }
  0xa4   :  { %v159_v33 = vadd.f32 %v158_v29, %v146_v63 }
  0xa5   :  { %v201_v3 = vpop.permute.xlu2 %200 }
  0xa6   :  { %v203_v25 = vsub.f32 %v685_v26, %v201_v3 }
  0xa8   :  { %v204_v30 = vand.u32 2147483647, %v203_v25 }
  0xa9   :  { %v162_v0 = vpop.permute.xlu1 %161 }
  0xaa   :  { %v188_v13 = vpop.permute.xlu0 %187  ;;  %v164_v17 = vsub.f32 %v685_v26, %v162_v0  ;;  %vm205_vm10 = vcmp.lt.f32.partialorder %v204_v30, 0.0001 }
  0xab   :  { %v190_v21 = vsub.f32 %v685_v26, %v188_v13 }
  0xac   :  { %v165_v20 = vand.u32 2147483647, %v164_v17 }
  0xad   :  { %v191_v28 = vand.u32 2147483647, %v190_v21 }
  0xae   :  { %v214_v6 = vpop.permute.xlu2 %213  ;;  %vm166_vm7 = vcmp.lt.f32.partialorder %v165_v20, 0.0001 }
  0xaf   :  { %v216_v31 = vsub.f32 %v685_v26, %v214_v6  ;;  %v171_v32 = vsel %vm166_vm7, %v169_v61, 0.0  ;;  %vm192_vm9 = vcmp.lt.f32.partialorder %v191_v28, 0.0001 }
  0xb0   :  { %v172_v37 = vadd.f32 %v171_v32, %v159_v33 }
  0xb1   :  { %v217_v38 = vand.u32 2147483647, %v216_v31  ;;  %v74_v31 = vld [vmem:[#allocation5] sm:$0x1f] }
  0xb2   :  { %v175_v2 = vpop.permute.xlu1 %174 }
  0xb3   :  { %v177_v19 = vsub.f32 %v685_v26, %v175_v2  ;;  %v221_v23 = vpop.permute.xlu0 %220  ;;  %vm218_vm11 = vcmp.lt.f32.partialorder %v217_v38, 0.0001 }
  0xb4   :  { %v223_v52 = vsel %vm218_vm11, %v221_v23, 0.0 }
  0xb5   :  { %v178_v24 = vand.u32 2147483647, %v177_v19 }
  0xb7   :  { %v234_v8 = vpop.permute.xlu2 %233  ;;  %vm179_vm8 = vcmp.lt.f32.partialorder %v178_v24, 0.0001 }
  0xb8   :  { %v184_v35 = vsel %vm179_vm8, %v182_v1, 0.0 }
  0xb9   :  { %v185_v43 = vadd.f32 %v184_v35, %v172_v37 }
  0xbb   :  { %v195_v5 = vpop.permute.xlu1 %194 }
  0xbc   :  { %v253_v36 = vpop.permute.xlu0 %252  ;;  %v197_v41 = vsel %vm192_vm9, %v195_v5, 0.0 }
  0xbd   :  { %v255_v45 = vsub.f32 %v685_v26, %v253_v36  ;;  %v198_v47 = vadd.f32 %v197_v41, %v185_v43 }
  0xbf   :  { %v256_v51 = vand.u32 2147483647, %v255_v45 }
  0xc0   :  { %v247_v10 = vpop.permute.xlu2 %246 }
  0xc1   :  { %vm257_vm14 = vcmp.lt.f32.partialorder %v256_v51, 0.0001 }
  0xc4   :  { %v208_v7 = vpop.permute.xlu1 %207 }
  0xc5   :  { %v210_v46 = vsel %vm205_vm10, %v208_v7, 0.0  ;;  %v292_v56 = vpop.permute.xlu0 %291 }
  0xc6   :  { %v211_v50 = vadd.f32 %v210_v46, %v198_v47  ;;  %v294_v63 = vsub.f32 %v685_v26, %v292_v56 }
  0xc8   :  { %v224_v57 = vadd.f32 %v223_v52, %v211_v50  ;;  %v295_v5 = vand.u32 2147483647, %v294_v63 }
  0xc9   :  { %v266_v12 = vpop.permute.xlu2 %265 }
  0xca   :  { %v268_v48 = vsub.f32 %v685_v26, %v266_v12  ;;  %vm296_vm1 = vcmp.lt.f32.partialorder %v295_v5, 0.0001 }
  0xcc   :  { %v269_v53 = vand.u32 2147483647, %v268_v48 }
  0xcd   :  { %v227_v9 = vpop.permute.xlu1 %226 }
  0xce   :  { %v229_v34 = vsub.f32 %v685_v26, %v227_v9  ;;  %vm270_vm15 = vcmp.lt.f32.partialorder %v269_v53, 0.0001 }
  0xd0   :  { %v230_v44 = vand.u32 2147483647, %v229_v34  ;;  %v356_v34 = vsub.f32 %v675_v15, %v74_v31 }
  0xd2   :  { %v279_v22 = vpop.permute.xlu2 %278  ;;  %vm231_vm12 = vcmp.lt.f32.partialorder %v230_v44, 0.0001 }
  0xd3   :  { %v281_v54 = vsub.f32 %v685_v26, %v279_v22  ;;  %v236_v55 = vsel %vm231_vm12, %v234_v8, 0.0 }
  0xd4   :  { %v237_v61 = vadd.f32 %v236_v55, %v224_v57 }
  0xd5   :  { %v282_v62 = vand.u32 2147483647, %v281_v54 }
  0xd6   :  { %v240_v11 = vpop.permute.xlu1 %239 }
  0xd7   :  { %v242_v39 = vsub.f32 %v685_v26, %v240_v11  ;;  %vm283_vm0 = vcmp.lt.f32.partialorder %v282_v62, 0.0001  ;;  %v331_v11 = vpop.permute.xlu0 %330 }
  0xd8   :  { %v333_v13 = vsub.f32 %v685_v26, %v331_v11 }
  0xd9   :  { %v243_v49 = vand.u32 2147483647, %v242_v39 }
  0xda   :  { %v286_v40 = vpop.permute.xlu2 %285  ;;  %v334_v19 = vand.u32 2147483647, %v333_v13 }
  0xdb   :  { %vm244_vm13 = vcmp.lt.f32.partialorder %v243_v49, 0.0001  ;;  %v288_v9 = vsel %vm283_vm0, %v286_v40, 0.0 }
  0xdc   :  { %v249_v60 = vsel %vm244_vm13, %v247_v10, 0.0  ;;  %vm335_vm3 = vcmp.lt.f32.partialorder %v334_v19, 0.0001 }
  0xdd   :  { %v250_v1 = vadd.f32 %v249_v60, %v237_v61 }
  0xdf   :  { %v260_v14 = vpop.permute.xlu1 %259  ;;  %v351_v28 = vpop.permute.xlu0 %350 }
  0xe0   :  { %v262_v0 = vsel %vm257_vm14, %v260_v14, 0.0 }
  0xe1   :  { %v263_v3 = vadd.f32 %v262_v0, %v250_v1 }
  0xe3   :  { %v299_v58 = vpop.permute.xlu2 %298 }
  0xe4   :  { %v301_v17 = vsel %vm296_vm1, %v299_v58, 0.0 }
  0xe8   :  { %v273_v27 = vpop.permute.xlu1 %272 }
  0xe9   :  { %v275_v2 = vsel %vm270_vm15, %v273_v27, 0.0 }
  0xea   :  { %v276_v7 = vadd.f32 %v275_v2, %v263_v3 }
  0xec   :  { %v344_v8 = vpop.permute.xlu2 %343  ;;  %v289_v16 = vadd.f32 %v288_v9, %v276_v7 }
  0xed   :  { %v346_v14 = vsub.f32 %v685_v26, %v344_v8 }
  0xee   :  { %v302_v21 = vadd.f32 %v301_v17, %v289_v16 }
  0xef   :  { %v347_v22 = vand.u32 2147483647, %v346_v14 }
  0xf1   :  { %v305_v42 = vpop.permute.xlu1 %304  ;;  %vm348_vm5 = vcmp.lt.f32.partialorder %v347_v22, 0.0001 }
  0xf2   :  { %v307_v6 = vsub.f32 %v685_v26, %v305_v42 }
  0xf4   :  { %v308_v10 = vand.u32 2147483647, %v307_v6 }
  0xf5   :  { %v338_v24 = vpop.permute.xlu2 %337 }
  0xf6   :  { %vm309_vm2 = vcmp.lt.f32.partialorder %v308_v10, 0.0001  ;;  %v340_v30 = vsel %vm335_vm3, %v338_v24, 0.0 }
  0xfa   :  { %v318_v59 = vpop.permute.xlu1 %317 }
  0xfb   :  { %v320_v12 = vsub.f32 %v685_v26, %v318_v59  ;;  %v353_v26 = vsel %vm348_vm5, %v351_v28, 0.0 }
  0xfd   :  { %v321_v18 = vand.u32 2147483647, %v320_v12 }
  0xff   :  { %vm322_vm4 = vcmp.lt.f32.partialorder %v321_v18, 0.0001 }
 0x103   :  { %v312_v4 = vpop.permute.xlu1 %311 }
 0x104   :  { %v314_v20 = vsel %vm309_vm2, %v312_v4, 0.0 }
 0x105   :  { %v315_v23 = vadd.f32 %v314_v20, %v302_v21 }
 0x10c   :  { %v325_v25 = vpop.permute.xlu1 %324 }
 0x10d   :  { %v327_v27 = vsel %vm322_vm4, %v325_v25, 0.0 }
 0x10e   :  { %v328_v29 = vadd.f32 %v327_v27, %v315_v23 }
 0x110   :  { %v341_v32 = vadd.f32 %v340_v30, %v328_v29 }
 0x112   :  { %v354_v33 = vadd.f32 %v353_v26, %v341_v32 }
 0x114   :  { %v355_v35 = vsub.f32 1.0, %v354_v33 }
 0x116   :  { %v357_v36 = vmul.f32 %v356_v34, %v355_v35 }
 0x118   :  { %v358_v37 = vmul.f32 %v357_v36, %v356_v34 }
 0x11a   :  { %v360_v38 = vsel %vm359_vm6, %v358_v37, 0.0 }
 0x11b   :  { %v361_v39 = vrot.slane %v360_v38, 4 }
 0x11d   :  { %v362_v40 = vadd.f32 %v361_v39, %v360_v38 }
 0x11f   :  { %v363_v41 = vrot.slane %v362_v40, 2 }
 0x121   :  { %v364_v42 = vadd.f32 %v363_v41, %v362_v40 }
 0x123   :  { %v365_v43 = vrot.slane %v364_v42, 1 }
 0x125   :  { %v366_v44 = vadd.f32 %v365_v43, %v364_v42 }
 0x127   :  { %367 = vst [vmem:[#allocation10] sm:$0x1] %v366_v44 }
 0x128   :  { %378 = dma.vmem_to_hbm [thread:$0]  %s374_s3, 16, %s376_s9, [#allocation4]  }
 0x129   :  { %585 = dma.done.wait [#allocation4], 16  }
 0x12a   :  { %586 = vsyncadd [#allocation4], 4294967280 }
 0x12b   :  { %383 = vsyncpa [#allocation3], 1 }
 0x12c   :  { %384 = vsyncpa [#allocation6], 1 }
 0x12d   :  { %385 = vsyncpa [#allocation9], 1 }
 0x12e   :  { %386 = vsyncpa [#allocation4], 1 }

</bundles_post_ra>
